<compile_context>
chip_gen: v6e
topology: v6e:2x2x1
jax: 0.10.0
libtpu: 0.0.40
codegen_flags: <defaults>
</compile_context>

<pallas_src>
import math

import jax
import jax.numpy as jnp
from jax.experimental import pallas as pl
from jax.experimental.pallas import tpu as pltpu

_LN_EPS = 1e-5


def _encoder_layer_kernel(x_ref, wt_ref, bff_ref, g1_ref, b1_ref, g2_ref, b2_ref,
                          o_ref):
    """One grid step: a (Bb, S, D) block of the batch.

    Matmul operands are cast to bf16 (MXU-native on v5e/v6e/v7x) with f32
    accumulation; residuals, softmax statistics and LayerNorm statistics are f32.
    """
    x = x_ref[...]                                   # (Bb, S, D) f32
    Bb, S, D = x.shape
    inv_sqrt_d = 1.0 / math.sqrt(D)
    inv_d = 1.0 / D

    # --- self-attention ------------------------------------------------------
    # Fold 1/sqrt(d) into a query-only copy (O(S*D) multiply, not O(S*S)).
    xk = x.astype(jnp.bfloat16)                      # keys / values operand
    xq = (x * inv_sqrt_d).astype(jnp.bfloat16)       # scaled queries

    # scores: contract the feature dim directly (no explicit x.T / XLU pass).
    scores = jax.lax.dot_general(
        xq, xk, dimension_numbers=(((2,), (2,)), ((0,), (0,))),
        preferred_element_type=jnp.float32)          # (Bb, S, S) f32
    scores = scores - jnp.max(scores, axis=-1, keepdims=True)
    p = jnp.exp(scores)                              # unnormalized weights, f32
    denom = jnp.sum(p, axis=-1, keepdims=True)       # (Bb, S, 1) f32

    # Deferred normalization: matmul first, then scale the (S, D) result.
    attn = jax.lax.dot_general(
        p.astype(jnp.bfloat16), xk,
        dimension_numbers=(((2,), (1,)), ((0,), (0,))),
        preferred_element_type=jnp.float32)          # (Bb, S, D) f32
    attn = attn * pl.reciprocal(denom, approx=True)  # EUP vrcp (free slot)
    # TODO(synk): for S >= ~512 (v7x) / ~1024 (v5e/v6e) add a query-tile grid
    # axis with online softmax so attention VMEM is O(Tq*S) instead of O(S^2).

    # --- residual + LayerNorm1 (flattened slab; S is a multiple of 8 so the
    # reshape stays a pure view) ----------------------------------------------
    h = (x + attn).reshape(Bb * S, D)

    def layer_norm(v, gamma, beta):
        # Single-pass statistics; clamp var to avoid NaN from cancellation.
        mu = jnp.sum(v, axis=-1, keepdims=True) * inv_d
        msq = jnp.sum(v * v, axis=-1, keepdims=True) * inv_d
        var = jnp.maximum(msq - mu * mu, 0.0)
        return (v - mu) * jax.lax.rsqrt(var + _LN_EPS) * gamma + beta

    h = layer_norm(h, g1_ref[...], b1_ref[...])      # (Bb*S, D)

    # --- feed-forward (Linear d_model -> d_model): one MXU matmul ------------
    ff = jnp.dot(h.astype(jnp.bfloat16), wt_ref[...],
                 preferred_element_type=jnp.float32) + bff_ref[...]

    # --- residual + LayerNorm2 ------------------------------------------------
    out = layer_norm(h + ff, g2_ref[...], b2_ref[...])
    o_ref[...] = out.reshape(Bb, S, D).astype(o_ref.dtype)


def _vmem_capacity_bytes():
    """Physical per-core VMEM; conservative 64 MiB (v7x per-TC) fallback."""
    try:
        return int(pltpu.get_tpu_info().vmem_capacity_bytes)
    except Exception:
        return 64 * 1024 * 1024


def _pick_block_b(B, S, D, vmem_limit_bytes):
    """Largest divisor of B whose per-step working set fits ~half the VMEM limit.

    Per-batch-row estimate (generous) includes double-buffered f32 in/out
    blocks, f32 activation temporaries + bf16 matmul-operand copies, and the
    O(S^2) attention temporaries (scores, p, bf16 p). Capped so the single
    'parallel' grid axis has >= 2 steps when B >= 2: v7x has 2 TensorCores and
    grid=(1,) would leave one idle (harmless on single-TC v5e/v6e).
    """
    per_b = 48 * S * D + 16 * S * S
    fixed = 4 * D * D + 64 * D            # weight (bf16, worst-case 2 bufs) + params
    budget = max(per_b, vmem_limit_bytes // 2 - fixed)
    bb = max(1, min(B, budget // per_b))
    if B >= 2:
        bb = min(bb, B // 2)
    while B % bb:
        bb -= 1
    return bb


def _invariant_spec(shape):
    """BlockSpec for a grid-invariant input: single-buffered if supported."""
    idx = lambda i: (0,) * len(shape)
    try:
        return pl.BlockSpec(shape, idx, pipeline_mode=pl.Buffered(1))
    except TypeError:  # older jax without pipeline_mode kwarg
        return pl.BlockSpec(shape, idx)


def encoder_layer(x, w_ff, b_ff, g1, b1, g2, b2):
    """x: (B, S, D) f32. w_ff is PyTorch-layout (out, in); bias/LN params are (D,)."""
    B, S, D = x.shape

    # One-time (D, D) weight prep: transpose for y = x @ W^T and cast to bf16
    # (halves its HBM/VMEM footprint). For repeated calls, precompute this once
    # outside the per-call path.
    w_t = jnp.transpose(w_ff).astype(jnp.bfloat16)
    as2d = lambda v: v.reshape(1, D)
    bff2, g1_2, b1_2, g2_2, b2_2 = map(as2d, (b_ff, g1, b1, g2, b2))

    vmem_cap = _vmem_capacity_bytes()
    # ~64-100 MiB on 128 MiB parts (v5e/v6e), <=48 MiB on 64 MiB v7x TCs.
    vmem_limit = int(min((vmem_cap * 3) // 4, 100 * 1024 * 1024))
    Bb = _pick_block_b(B, S, D, vmem_limit)
    grid = (B // Bb,)

    x_spec = pl.BlockSpec((Bb, S, D), lambda i: (i, 0, 0))
    out_spec = pl.BlockSpec((Bb, S, D), lambda i: (i, 0, 0))

    return pl.pallas_call(
        _encoder_layer_kernel,
        out_shape=jax.ShapeDtypeStruct((B, S, D), x.dtype),
        grid=grid,
        in_specs=[
            x_spec,                       # x block (double-buffered)
            _invariant_spec((D, D)),      # W^T (bf16, grid-invariant)
            _invariant_spec((1, D)),      # b_ff
            _invariant_spec((1, D)),      # gamma1
            _invariant_spec((1, D)),      # beta1
            _invariant_spec((1, D)),      # gamma2
            _invariant_spec((1, D)),      # beta2
        ],
        out_specs=out_spec,
        compiler_params=pltpu.CompilerParams(
            dimension_semantics=("parallel",),
            vmem_limit_bytes=vmem_limit),
    )(x, w_t, bff2, g1_2, b1_2, g2_2, b2_2)


def reference(x, w_ff, b_ff, g1, b1, g2, b2):
    """Pure-JAX f32 reference mirroring the PyTorch forward (eval mode)."""
    D = x.shape[-1]
    scores = jnp.einsum("bsd,btd->bst", x, x) / math.sqrt(D)
    w = jax.nn.softmax(scores, axis=-1)
    attn = jnp.einsum("bst,btd->bsd", w, x)
    x1 = x + attn
    x1 = (x1 - x1.mean(-1, keepdims=True)) / jnp.sqrt(x1.var(-1, keepdims=True) + _LN_EPS)
    x1 = x1 * g1 + b1
    ff = jnp.einsum("bsd,ed->bse", x1, w_ff) + b_ff
    x2 = x1 + ff
    x2 = (x2 - x2.mean(-1, keepdims=True)) / jnp.sqrt(x2.var(-1, keepdims=True) + _LN_EPS)
    return x2 * g2 + b2


if __name__ == "__main__":
    # TODO(synk): training-mode dropout (stateful RNG) not implemented; eval-mode
    # identity semantics are used, matching module.eval().
    B, S, D = 2, 8, 32   # batch, seq, d_model
    key = jax.random.PRNGKey(0)
    kx, kw, kb, kg1, kb1, kg2, kb2 = jax.random.split(key, 7)

    x = jax.random.normal(kx, (B, S, D), dtype=jnp.float32)
    # nn.Linear(d_model, d_model): weight (D, D), bias (D)
    w_ff = jax.random.normal(kw, (D, D), dtype=jnp.float32) * (1.0 / math.sqrt(D))
    b_ff = jax.random.normal(kb, (D,), dtype=jnp.float32) * 0.01
    # LayerNorms: perturb from default (1, 0) deterministically
    g1 = 1.0 + 0.01 * jax.random.normal(kg1, (D,), dtype=jnp.float32)
    b1 = 0.01 * jax.random.normal(kb1, (D,), dtype=jnp.float32)
    g2 = 1.0 + 0.01 * jax.random.normal(kg2, (D,), dtype=jnp.float32)
    b2 = 0.01 * jax.random.normal(kb2, (D,), dtype=jnp.float32)

    out = encoder_layer(x, w_ff, b_ff, g1, b1, g2, b2)
    out = jax.block_until_ready(out)

    ref = reference(x, w_ff, b_ff, g1, b1, g2, b2)
    assert out.shape == (B, S, D)
    assert not bool(jnp.any(jnp.isnan(out)))
    # Tolerance accounts for bf16 MXU operands (typical max-abs error ~1e-2 to
    # 3e-2 at these shapes vs. the f32 reference) and approx reciprocal softmax.
    err = float(jnp.max(jnp.abs(out - ref)))
    assert jnp.allclose(out, ref, atol=1e-1, rtol=1e-1), err

    print("KERNEL_OK")
</pallas_src>

<mosaic_0001>
module attributes {stable_mosaic.version = 11 : i64} {
  func.func @_encoder_layer_kernel(%arg0: i32, %arg1: memref<1x8x32xf32, #tpu.memory_space<vmem>>, %arg2: memref<32x32xbf16, #tpu.memory_space<vmem>>, %arg3: memref<1x32xf32, #tpu.memory_space<vmem>>, %arg4: memref<1x32xf32, #tpu.memory_space<vmem>>, %arg5: memref<1x32xf32, #tpu.memory_space<vmem>>, %arg6: memref<1x32xf32, #tpu.memory_space<vmem>>, %arg7: memref<1x32xf32, #tpu.memory_space<vmem>>, %arg8: memref<1x8x32xf32, #tpu.memory_space<vmem>>) attributes {dimension_semantics = [#tpu.dimension_semantics<parallel>], iteration_bounds = array<i64: 2>, scalar_prefetch = 0 : i64, scratch_operands = 0 : i64, tpu.core_type = #tpu.core_type<tc>, window_params = [{transform_indices = @transform_0, window_bounds = array<i64: 1, 8, 32>}, {pipeline_mode = #tpu.pipeline_mode<synchronous>, transform_indices = @transform_1, window_bounds = array<i64: 32, 32>}, {pipeline_mode = #tpu.pipeline_mode<synchronous>, transform_indices = @transform_2, window_bounds = array<i64: 1, 32>}, {pipeline_mode = #tpu.pipeline_mode<synchronous>, transform_indices = @transform_3, window_bounds = array<i64: 1, 32>}, {pipeline_mode = #tpu.pipeline_mode<synchronous>, transform_indices = @transform_4, window_bounds = array<i64: 1, 32>}, {pipeline_mode = #tpu.pipeline_mode<synchronous>, transform_indices = @transform_5, window_bounds = array<i64: 1, 32>}, {pipeline_mode = #tpu.pipeline_mode<synchronous>, transform_indices = @transform_6, window_bounds = array<i64: 1, 32>}, {transform_indices = @transform_7, window_bounds = array<i64: 1, 8, 32>}]} {
    %c0 = arith.constant 0 : index
    %c0_0 = arith.constant 0 : index
    %c0_1 = arith.constant 0 : index
    %0 = vector.load %arg1[%c0, %c0_0, %c0_1] : memref<1x8x32xf32, #tpu.memory_space<vmem>>, vector<1x8x32xf32>
    %1 = arith.truncf %0 : vector<1x8x32xf32> to vector<1x8x32xbf16>
    %cst = arith.constant 0.176776692 : f32
    %2 = vector.broadcast %cst : f32 to vector<1x8x32xf32>
    %3 = arith.mulf %0, %2 : vector<1x8x32xf32>
    %4 = arith.truncf %3 : vector<1x8x32xf32> to vector<1x8x32xbf16>
    %cst_2 = arith.constant dense<0.000000e+00> : vector<1x8x8xf32>
    %5 = tpu.matmul %4, %1, %cst_2 {dimension_numbers = #tpu.dot_dimension_numbers<[2], [2], [1], [1], [0, 0, 0, 1, 1, 1], [0], [0]>} : vector<1x8x32xbf16>, vector<1x8x32xbf16>, vector<1x8x8xf32> -> vector<1x8x8xf32>
    %cst_3 = arith.constant dense<0xFF800000> : vector<1x8xf32>
    %6 = vector.multi_reduction <maximumf>, %5, %cst_3 [2] : vector<1x8x8xf32> to vector<1x8xf32>
    %7 = vector.shape_cast %6 : vector<1x8xf32> to vector<1x8x1xf32>
    %8 = vector.broadcast %7 : vector<1x8x1xf32> to vector<1x8x8xf32>
    %9 = arith.subf %5, %8 : vector<1x8x8xf32>
    %10 = math.exp %9 : vector<1x8x8xf32>
    %cst_4 = arith.constant dense<0.000000e+00> : vector<1x8xf32>
    %11 = vector.multi_reduction <add>, %10, %cst_4 [2] : vector<1x8x8xf32> to vector<1x8xf32>
    %12 = vector.shape_cast %11 : vector<1x8xf32> to vector<1x8x1xf32>
    %13 = arith.truncf %10 : vector<1x8x8xf32> to vector<1x8x8xbf16>
    %cst_5 = arith.constant dense<0.000000e+00> : vector<1x8x32xf32>
    %14 = tpu.matmul %13, %1, %cst_5 {dimension_numbers = #tpu.dot_dimension_numbers<[2], [1], [1], [2], [0, 0, 0, 1, 1, 2], [0], [0]>} : vector<1x8x8xbf16>, vector<1x8x32xbf16>, vector<1x8x32xf32> -> vector<1x8x32xf32>
    %15 = tpu.reciprocal %12 {approx = true} : vector<1x8x1xf32> -> vector<1x8x1xf32>
    %16 = vector.broadcast %15 : vector<1x8x1xf32> to vector<1x8x32xf32>
    %17 = arith.mulf %14, %16 : vector<1x8x32xf32>
    %18 = arith.addf %0, %17 : vector<1x8x32xf32>
    %19 = vector.shape_cast %18 : vector<1x8x32xf32> to vector<8x32xf32>
    %c0_6 = arith.constant 0 : index
    %c0_7 = arith.constant 0 : index
    %20 = vector.load %arg4[%c0_6, %c0_7] : memref<1x32xf32, #tpu.memory_space<vmem>>, vector<1x32xf32>
    %c0_8 = arith.constant 0 : index
    %c0_9 = arith.constant 0 : index
    %21 = vector.load %arg5[%c0_8, %c0_9] : memref<1x32xf32, #tpu.memory_space<vmem>>, vector<1x32xf32>
    %cst_10 = arith.constant dense<0.000000e+00> : vector<8xf32>
    %22 = vector.multi_reduction <add>, %19, %cst_10 [1] : vector<8x32xf32> to vector<8xf32>
    %23 = vector.shape_cast %22 : vector<8xf32> to vector<8x1xf32>
    %cst_11 = arith.constant 3.125000e-02 : f32
    %24 = vector.broadcast %cst_11 : f32 to vector<8x1xf32>
    %25 = arith.mulf %23, %24 : vector<8x1xf32>
    %26 = arith.mulf %19, %19 : vector<8x32xf32>
    %cst_12 = arith.constant dense<0.000000e+00> : vector<8xf32>
    %27 = vector.multi_reduction <add>, %26, %cst_12 [1] : vector<8x32xf32> to vector<8xf32>
    %28 = vector.shape_cast %27 : vector<8xf32> to vector<8x1xf32>
    %cst_13 = arith.constant 3.125000e-02 : f32
    %29 = vector.broadcast %cst_13 : f32 to vector<8x1xf32>
    %30 = arith.mulf %28, %29 : vector<8x1xf32>
    %31 = arith.mulf %25, %25 : vector<8x1xf32>
    %32 = arith.subf %30, %31 : vector<8x1xf32>
    %cst_14 = arith.constant 0.000000e+00 : f32
    %33 = vector.broadcast %cst_14 : f32 to vector<8x1xf32>
    %34 = arith.maximumf %32, %33 : vector<8x1xf32>
    %35 = vector.broadcast %25 : vector<8x1xf32> to vector<8x32xf32>
    %36 = arith.subf %19, %35 : vector<8x32xf32>
    %cst_15 = arith.constant 9.99999974E-6 : f32
    %37 = vector.broadcast %cst_15 : f32 to vector<8x1xf32>
    %38 = arith.addf %34, %37 : vector<8x1xf32>
    %39 = math.rsqrt %38 : vector<8x1xf32>
    %40 = vector.broadcast %39 : vector<8x1xf32> to vector<8x32xf32>
    %41 = arith.mulf %36, %40 : vector<8x32xf32>
    %42 = vector.broadcast %20 : vector<1x32xf32> to vector<8x32xf32>
    %43 = arith.mulf %41, %42 : vector<8x32xf32>
    %44 = vector.broadcast %21 : vector<1x32xf32> to vector<8x32xf32>
    %45 = arith.addf %43, %44 : vector<8x32xf32>
    %46 = arith.truncf %45 : vector<8x32xf32> to vector<8x32xbf16>
    %c0_16 = arith.constant 0 : index
    %c0_17 = arith.constant 0 : index
    %47 = vector.load %arg2[%c0_16, %c0_17] : memref<32x32xbf16, #tpu.memory_space<vmem>>, vector<32x32xbf16>
    %cst_18 = arith.constant dense<0.000000e+00> : vector<8x32xf32>
    %48 = tpu.matmul %46, %47, %cst_18 {dimension_numbers = #tpu.dot_dimension_numbers<[1], [0], [0], [1], [0, 0, 1, 1], [], []>} : vector<8x32xbf16>, vector<32x32xbf16>, vector<8x32xf32> -> vector<8x32xf32>
    %c0_19 = arith.constant 0 : index
    %c0_20 = arith.constant 0 : index
    %49 = vector.load %arg3[%c0_19, %c0_20] : memref<1x32xf32, #tpu.memory_space<vmem>>, vector<1x32xf32>
    %50 = vector.broadcast %49 : vector<1x32xf32> to vector<8x32xf32>
    %51 = arith.addf %48, %50 : vector<8x32xf32>
    %52 = arith.addf %45, %51 : vector<8x32xf32>
    %c0_21 = arith.constant 0 : index
    %c0_22 = arith.constant 0 : index
    %53 = vector.load %arg6[%c0_21, %c0_22] : memref<1x32xf32, #tpu.memory_space<vmem>>, vector<1x32xf32>
    %c0_23 = arith.constant 0 : index
    %c0_24 = arith.constant 0 : index
    %54 = vector.load %arg7[%c0_23, %c0_24] : memref<1x32xf32, #tpu.memory_space<vmem>>, vector<1x32xf32>
    %cst_25 = arith.constant dense<0.000000e+00> : vector<8xf32>
    %55 = vector.multi_reduction <add>, %52, %cst_25 [1] : vector<8x32xf32> to vector<8xf32>
    %56 = vector.shape_cast %55 : vector<8xf32> to vector<8x1xf32>
    %cst_26 = arith.constant 3.125000e-02 : f32
    %57 = vector.broadcast %cst_26 : f32 to vector<8x1xf32>
    %58 = arith.mulf %56, %57 : vector<8x1xf32>
    %59 = arith.mulf %52, %52 : vector<8x32xf32>
    %cst_27 = arith.constant dense<0.000000e+00> : vector<8xf32>
    %60 = vector.multi_reduction <add>, %59, %cst_27 [1] : vector<8x32xf32> to vector<8xf32>
    %61 = vector.shape_cast %60 : vector<8xf32> to vector<8x1xf32>
    %cst_28 = arith.constant 3.125000e-02 : f32
    %62 = vector.broadcast %cst_28 : f32 to vector<8x1xf32>
    %63 = arith.mulf %61, %62 : vector<8x1xf32>
    %64 = arith.mulf %58, %58 : vector<8x1xf32>
    %65 = arith.subf %63, %64 : vector<8x1xf32>
    %cst_29 = arith.constant 0.000000e+00 : f32
    %66 = vector.broadcast %cst_29 : f32 to vector<8x1xf32>
    %67 = arith.maximumf %65, %66 : vector<8x1xf32>
    %68 = vector.broadcast %58 : vector<8x1xf32> to vector<8x32xf32>
    %69 = arith.subf %52, %68 : vector<8x32xf32>
    %cst_30 = arith.constant 9.99999974E-6 : f32
    %70 = vector.broadcast %cst_30 : f32 to vector<8x1xf32>
    %71 = arith.addf %67, %70 : vector<8x1xf32>
    %72 = math.rsqrt %71 : vector<8x1xf32>
    %73 = vector.broadcast %72 : vector<8x1xf32> to vector<8x32xf32>
    %74 = arith.mulf %69, %73 : vector<8x32xf32>
    %75 = vector.broadcast %53 : vector<1x32xf32> to vector<8x32xf32>
    %76 = arith.mulf %74, %75 : vector<8x32xf32>
    %77 = vector.broadcast %54 : vector<1x32xf32> to vector<8x32xf32>
    %78 = arith.addf %76, %77 : vector<8x32xf32>
    %79 = vector.shape_cast %78 : vector<8x32xf32> to vector<1x8x32xf32>
    %c0_31 = arith.constant 0 : index
    %c0_32 = arith.constant 0 : index
    %c0_33 = arith.constant 0 : index
    %80 = vector.load %arg8[%c0_31, %c0_32, %c0_33] : memref<1x8x32xf32, #tpu.memory_space<vmem>>, vector<1x8x32xf32>
    tpu.vector_store %arg8[%c0_31, %c0_32, %c0_33], %79 {strides = array<i32>} : memref<1x8x32xf32, #tpu.memory_space<vmem>>, vector<1x8x32xf32>,
    return
  }
  func.func @transform_0(%arg0: i32) -> (i32, i32, i32) {
    %c0_i32 = arith.constant 0 : i32
    %c0_i32_0 = arith.constant 0 : i32
    %c0_i32_1 = arith.constant 0 : i32
    return %arg0, %c0_i32, %c0_i32_0 : i32, i32, i32
  }
  func.func @transform_1(%arg0: i32) -> (i32, i32) {
    %c0_i32 = arith.constant 0 : i32
    %c0_i32_0 = arith.constant 0 : i32
    %c0_i32_1 = arith.constant 0 : i32
    return %c0_i32, %c0_i32_0 : i32, i32
  }
  func.func @transform_2(%arg0: i32) -> (i32, i32) {
    %c0_i32 = arith.constant 0 : i32
    %c0_i32_0 = arith.constant 0 : i32
    %c0_i32_1 = arith.constant 0 : i32
    return %c0_i32, %c0_i32_0 : i32, i32
  }
  func.func @transform_3(%arg0: i32) -> (i32, i32) {
    %c0_i32 = arith.constant 0 : i32
    %c0_i32_0 = arith.constant 0 : i32
    %c0_i32_1 = arith.constant 0 : i32
    return %c0_i32, %c0_i32_0 : i32, i32
  }
  func.func @transform_4(%arg0: i32) -> (i32, i32) {
    %c0_i32 = arith.constant 0 : i32
    %c0_i32_0 = arith.constant 0 : i32
    %c0_i32_1 = arith.constant 0 : i32
    return %c0_i32, %c0_i32_0 : i32, i32
  }
  func.func @transform_5(%arg0: i32) -> (i32, i32) {
    %c0_i32 = arith.constant 0 : i32
    %c0_i32_0 = arith.constant 0 : i32
    %c0_i32_1 = arith.constant 0 : i32
    return %c0_i32, %c0_i32_0 : i32, i32
  }
  func.func @transform_6(%arg0: i32) -> (i32, i32) {
    %c0_i32 = arith.constant 0 : i32
    %c0_i32_0 = arith.constant 0 : i32
    %c0_i32_1 = arith.constant 0 : i32
    return %c0_i32, %c0_i32_0 : i32, i32
  }
  func.func @transform_7(%arg0: i32) -> (i32, i32, i32) {
    %c0_i32 = arith.constant 0 : i32
    %c0_i32_0 = arith.constant 0 : i32
    %c0_i32_1 = arith.constant 0 : i32
    return %arg0, %c0_i32, %c0_i32_0 : i32, i32, i32
  }
}

</mosaic_0001>

<bundles_post_ra>
// kernel: tpu_custom_call.1
= control target key start
LH: loop header
LB: loop body
LE: loop exit
PB: predicated region body
PF: predicated region fallthrough
CT: control target
= control target key end

     0   :  { %s1128_s0 = inlined_call_operand.hbm [shape: f32[2,8,32], index: 0, kind: input, shape index: {}]   ;;  %s1129_s1 = inlined_call_operand.hbm [shape: bf16[32,32], index: 1, kind: input, shape index: {}]   ;;  %s1130_s2 = inlined_call_operand.vmem [shape: f32[1,32], index: 2, kind: input, shape index: {}]   ;;  %s1131_s3 = inlined_call_operand.vmem [shape: f32[1,32], index: 3, kind: input, shape index: {}]   ;;  %s1132_s4 = inlined_call_operand.vmem [shape: f32[1,32], index: 4, kind: input, shape index: {}]   ;;  %s1133_s5 = inlined_call_operand.vmem [shape: f32[1,32], index: 5, kind: input, shape index: {}]   ;;  %s1134_s6 = inlined_call_operand.vmem [shape: f32[1,32], index: 6, kind: input, shape index: {}]   ;;  %s1135_s7 = inlined_call_operand.hbm [shape: f32[2,8,32], index: 7, kind: output, shape index: {}]  }
   0x1   :  { %1140 = sst [smem:[#allocation12_spill]] %s1129_s1 }
   0x2   :  { %12 = vsyncpa [#allocation3], 0 }
   0x3   :  { %14 = vsyncpa [#allocation3 + $0x1], 0 }
   0x4   :  { %15 = vsyncpa [#allocation6], 0 }
   0x5   :  { %16 = vsyncpa [#allocation4], 0 }
   0x6   :  { %18 = vsyncpa [#allocation4 + $0x1], 0  ;;  %s941_s24 = smov 0   ;;  %s943_s25 = smov 0  }
   0x7   :  { %s945_s26 = smov 0   ;;  %s947_s27 = smov 0  }
   0x8 LB: > { %s962_s28 = sadd.s32 4294967295, %s892_s27   ;;  %s648_s29 = sadd.s32 4294967294, %s892_s27   ;;  %s892_s27 = sphi %s947_s27, %s1161_s27   ;;  %s888_s26 = sphi %s945_s26, %s1160_s26   ;;  %s884_s25 = sphi %s943_s25, %s1159_s25   ;;  %s880_s24 = sphi %s941_s24, %s1158_s24  }
   0x9   : > { %p44_p0 = scmp.ne.s32.totalorder %s884_s25, %s880_s24  ;;  %p1136_p1 = scmp.eq.s32.totalorder %s962_s28, 0 }
   0xa   : > { %p200_p3 = scmp.eq.s32.totalorder %s648_s29, 1  ;;  %p649_p5 = scmp.ge.s32.totalorder %s892_s27, 1 }
   0xb   : > { %p971_p4 = por %p1136_p1, %p44_p0  ;;  %p207_p7 = scmp.lt.s32.totalorder %s892_s27, 3 }
   0xc   : > { %p976_p6 = por %p200_p3, %p44_p0  ;;  %s894_s10 = smov [#allocation5]  }
   0xd   : > { %s1141_s30 = scalar_select %p971_p4, 1, 0 }
   0xe   : > { %s1142_s8 = scalar_select %p976_p6, 1, 0 }
   0xf   : > { %p981_p8 = pnand %p649_p5, %p207_p7  ;;  %s219_s11 = sshll.u32 %s894_s10, 4  ;;  %s220_s11 = int_to_ptr.vmem [resolvable:$true] %s219_s11 }
  0x10   : > { %s995_s13 = sadd.s32 1, %s892_s27   ;;  %s31_s14 = sadd.s32 1, %s888_s26 }
  0x11   : > { %s1143_s9 = scalar_select %p981_p8, 1, 0 }
  0x12   : > { %p707_p9 = pneg %p981_p8  ;;  %s28_s15 = ssub.s32 %s892_s27, %s995_s13 }
  0x13   : > { %s781_s16 = scalar_lea.vmem %s220_s11, 256  ;;  %p789_p5 = scmp.lt.s32.totalorder %s220_s11, %s220_s11 }
  0x14   : > { %p990_p11 = pnand %p707_p9, %p1136_p1  ;;  %p782_p13 = scmp.ne.s32.totalorder %s220_s11, %s781_s16 }
  0x15   : > { %p790_p7 = scmp.lt.s32.totalorder %s781_s16, %s781_s16 }
  0x16   : > { %p772_p12 = pneg %p990_p11 }
  0x17   : > { %p791_p10 = por %p790_p7, %p789_p5 }
  0x18   : > { %p784_p0 = pnand %p782_p13, %p772_p12 }
  0x1a   : > { %p785_p3 = pneg %p784_p0 }
  0x1c   : > { %p792_p2 = pnand %p791_p10, %p785_p3 }
  0x1e   : > { %795 = shalt.err (!%p792_p2)
}
  0x1f   : > { %s895_s17 = smov 64   ;;  %s896_s18 = smov 4  }
  0x20   : > { %s1145_s1 = sld [smem:[#allocation12_spill]]  ;;  %p29_p9 = scmp.eq.s32.totalorder %s28_s15, 0 }
  0x21   : > { %p38_p12 = scmp.ne.s32.totalorder %s888_s26, %s884_s25  ;;  %p39_p10 = scmp.eq.s32.totalorder %s892_s27, 0 }
  0x22   : > { %p720_p2 = scmp.lt.s32.totalorder %s892_s27, 2  ;;  %p1147_p0 = scmp.eq.s32.totalorder %s962_s28, 1 }
  0x23   : > { %s1012_s21 = scalar_select %p29_p9, %s888_s26, %s31_s14  }
  0x24   : > { %p40_p13 = por %p39_p10, %p38_p12  ;;  %p1016_p3 = por %p1147_p0, %p38_p12 }
  0x25   : > { %1146 = sst [smem:[#allocation11_spill]] %s1012_s21  ;;  %s248_s23 = sand.u32 1, %s888_s26  }
  0x26   : > { %710 = dma.hbm_to_vmem [thread:$0]  (!%p990_p11), %s1145_s1, 256, %s220_s11, [#allocation6], %s895_s17, %s895_s17, %s896_s18  }
  0x27   : > { %s1148_s22 = scalar_select %p1016_p3, 1, 0 }
  0x28   : > { %s653_s29 = sshll.u32 %s892_s27, 7  ;;  %s652_s10 = sshll.u32 %s248_s23, 3 }
  0x29   : > { %s1025_s19 = scalar_lea.hbm %s1128_s0, %s653_s29  ;;  %s252_s11 = scalar_lea.vmem [#allocation2], %s652_s10 }
  0x2a   : > { %s259_s14 = sshll.u32 %s252_s11, 4  ;;  %p1027_p11 = pnand %p720_p2, %p40_p13  ;;  %s260_s14 = int_to_ptr.vmem [resolvable:$true] %s259_s14 }
  0x2b   : > { %s249_s17 = scalar_lea.sflag [#allocation3], %s248_s23  ;;  %s796_s18 = scalar_lea.hbm %s1025_s19, 128 }
  0x2c   : > { %p797_p5 = scmp.ne.s32.totalorder %s1025_s19, %s796_s18  ;;  %p798_p7 = pneg %p1027_p11 }
  0x2d   : > { %s801_s12 = scalar_lea.hbm %s1128_s0, 256  ;;  %p802_p10 = scmp.lt.s32.totalorder %s1025_s19, %s1128_s0 }
  0x2e   : > { %p799_p9 = pnand %p798_p7, %p797_p5  ;;  %p803_p2 = scmp.lt.s32.totalorder %s801_s12, %s796_s18 }
  0x30   : > { %p800_p12 = pneg %p799_p9  ;;  %p804_p13 = por %p803_p2, %p802_p10 }
  0x32   : > { %p805_p0 = pnand %p804_p13, %p800_p12 }
  0x34   : > { %808 = shalt.err (!%p805_p0)
}
  0x35   : > { %s809_s11 = scalar_lea.vmem %s260_s14, 128  ;;  %s897_s23 = smov [#allocation2]  }
  0x36   : > { %p810_p1 = scmp.ne.s32.totalorder %s260_s14, %s809_s11  ;;  %s814_s1 = sshll.u32 %s897_s23, 4  ;;  %s815_s1 = int_to_ptr.vmem [resolvable:$false] %s814_s1 }
  0x37   : > { %s816_s21 = scalar_lea.vmem %s815_s1, 256  ;;  %p817_p5 = scmp.lt.s32.totalorder %s260_s14, %s815_s1 }
  0x38   : > { %p812_p6 = pnand %p810_p1, %p798_p7  ;;  %p818_p9 = scmp.lt.s32.totalorder %s816_s21, %s809_s11 }
  0x3a   : > { %p813_p3 = pneg %p812_p6  ;;  %p819_p4 = por %p818_p9, %p817_p5 }
  0x3c   : > { %p820_p8 = pnand %p819_p4, %p813_p3 }
  0x3e   : > { %823 = shalt.err (!%p820_p8)
}
  0x3f   : > { %714 = dma.hbm_to_vmem [thread:$0]  (!%p1027_p11), %s1025_s19, 128, %s260_s14, %s249_s17  }
  0x40   : > { %p1150_p12 = scmp.ne.s32.totalorder %s1143_s9, 0 }
  0x41   : > { %s1048_s18 = sand.u32 (!%p1150_p12), 1, %s884_s25   ;;  %p1151_p1 = scmp.ne.s32.totalorder (!%p1150_p12), %s1141_s30, 0 }
  0x42   : > { %268 = sbr.rel (%p1150_p12) target bundleno = 1187 (0x4a3), region = 48  ;;  %s655_s20 = sshll.u32 (!%p1150_p12), %s1048_s18, 3 }
  0x43   : > { %s271_s1 = scalar_lea.sflag (!%p1150_p12), [#allocation3], %s1048_s18  ;;  %s274_s21 = scalar_lea.vmem (!%p1150_p12), [#allocation2], %s655_s20 }
  0x47   : > { %867 = dma.done.wait (%p1151_p1), %s271_s1, 128  }
  0x48   : > { %869 = vsyncadd (%p1151_p1), %s271_s1, 4294967168  ;;  %p1152_p4 = scmp.eq.s32.totalorder %s962_s28, 0 }
  0x4a   : > { %871 = dma.done.wait (%p1152_p4), [#allocation6], 256   ;;  %p1153_p6 = pmov %p1152_p4 }
  0x4b   : > { %v898_v0 = vmov 0.0   ;;  %vm899_vm0 = vmmov 0   ;;  %v310_v1 = vld [vmem:[%s274_s21] sm:$0xff]  ;;  %vm314_vm1 = vcmask 261120   ;;  %vm361_vm2 = vcmask 64512   ;;  %v760_v29 = vld [vmem:[#allocation5 + $0x8] sm:$0xff]  }
  0x4c   : > { %873 = vsyncadd (%p1153_p6), [#allocation6], 4294967040  ;;  %679 = vmatprep.subr.bf16.mxu0 %v898_v0  ;;  %681 = vmatprep.mubr.msk.bf16.mxu0 %vm899_vm0, %v898_v0  ;;  %v311_v2 = vpack.c.bf16 %v310_v1, %v310_v1  ;;  %v312_v3 = vmul.f32 0.17677669, %v310_v1  ;;  %vm375_vm3 = vcmask 1043456   ;;  %v761_v30 = vld [vmem:[#allocation5] sm:$0xff]  }
  0x4d   : > { %685 = vmatprep.subr.bf16.mxu1 %v898_v0  ;;  %687 = vmatprep.mubr.msk.bf16.mxu1 %vm899_vm0, %v898_v0  ;;  %v660_v41 = vld [vmem:[%s1131_s3] ss:$0 sm:$0xff]  ;;  %s669_s11 = sshll.u32 %s962_s28, 7  ;;  %s308_s23 = scalar_lea.vmem [#allocation7], %s655_s20 }
  0x4e   : > { %v319_v4 = vsel %vm314_vm1, %v311_v2, 0  ;;  %v313_v5 = vpack.c.bf16 %v312_v3, %v312_v3  ;;  %v376_v11 = vsel %vm375_vm3, %v311_v2, 0  ;;  %v661_v43 = vld [vmem:[%s1132_s4] ss:$0 sm:$0xff]  ;;  %s568_s1 = sshll.u32 %s308_s23, 4  ;;  %s566_s9 = scalar_lea.hbm %s1135_s7, %s669_s11  ;;  %s569_s1 = int_to_ptr.vmem [resolvable:$true] %s568_s1 }
  0x4f   : > { %680 = vmatpush3.bf16.xpose.msra.mxu0 %v319_v4  ;;  %686 = vmatpush3.bf16.msra.mxu1 %v376_v11  ;;  %v662_v47 = vld [vmem:[%s1130_s2] ss:$0 sm:$0xff]  ;;  %s555_s19 = scalar_lea.sflag [#allocation4], %s1048_s18  ;;  %s824_s14 = scalar_lea.vmem %s569_s1, 128 }
  0x50   : > { %691 = vmatprep.subr.bf16.mxu1 %v898_v0  ;;  %v666_v3 = vld [vmem:[%s1133_s5] ss:$0 sm:$0xff]  ;;  %p825_p8 = scmp.ne.s32.totalorder %s569_s1, %s824_s14  ;;  %p1154_p3 = scmp.ne.s32.totalorder %s1148_s22, 0 }
  0x51   : > { %s900_s15 = smov [#allocation7]  }
  0x52   : > { %p826_p11 = pnand %p825_p8, %p1154_p3  ;;  %s828_s28 = sshll.u32 %s900_s15, 4  ;;  %s829_s28 = int_to_ptr.vmem [resolvable:$false] %s828_s28 }
  0x53   : > { %s830_s20 = scalar_lea.vmem %s829_s28, 256  ;;  %p831_p10 = scmp.lt.s32.totalorder %s569_s1, %s829_s28 }
  0x54   : > { %p827_p7 = pneg %p826_p11  ;;  %p832_p2 = scmp.lt.s32.totalorder %s830_s20, %s824_s14 }
  0x56   : > { %682 = vmatmul.mubr.msk.bf16.vlgmr.msra.gmra.mxu0 %vm314_vm1, %v313_v5  ;;  %v667_v5 = vld [vmem:[%s1134_s6] ss:$0 sm:$0xff]  ;;  %p833_p13 = por %p832_p2, %p831_p10 }
  0x58   : > { %p834_p0 = pnand %p833_p13, %p827_p7 }
 0x116   : > { %v355_v6 = vpop.f32.mrf.mxu0 }
 0x117   : > { %v362_v7 = vsel %vm361_vm2, %v355_v6, -inf }
 0x118   : > { %363 = vmax.xlane.f32.xlu0 %v362_v7  ;;  %v683_v8 = vpop.f32.mrf.mxu0 }
 0x11a   : > { %v358_v9 = vpop.f32.mrf.mxu0 }
 0x11c   : > { %v684_v10 = vpop.f32.mrf.mxu0 }
 0x1a1   : > { %v364_v12 = vpop.xlane.xlu0 %363 }
 0x1a2   : > { %v365_v13 = vsub.f32 %v355_v6, %v364_v12 }
 0x1a4   : > { %v366_v14 = vmul.f32 1.442695, %v365_v13 }
 0x1a6   : > { %762 = vpow2.f32 %v366_v14 }
 0x1b3   : > { %v763_v15 = vpop.eup %762 }
 0x1b4   : > { %v368_v16 = vsel %vm361_vm2, %v763_v15, 0.0  ;;  %v371_v17 = vpack.c.bf16 %v763_v15, %v763_v15 }
 0x1b5   : > { %369 = vadd.xlane.f32.xlu0 %v368_v16 }
 0x1b6   : > { %688 = vmatmul.mubr.msk.bf16.vlgmr.msra.gmra.mxu1 %vm361_vm2, %v371_v17 }
 0x1b7   : > { %695 = vmatprep.mubr.msk.bf16.mxu1 %vm899_vm0, %v898_v0  ;;  %692 = vmatpush3.bf16.msra.mxu1 %v760_v29 }
 0x1b8   : > { %693 = vmatprep.subr.bf16.mxu1 %v898_v0 }
 0x1bb   : > { %694 = vmatpush3.bf16.msra.mxu1 %v761_v30 }
 0x23e   : > { %v370_v18 = vpop.xlane.xlu0 %369 }
 0x23f   : > { %764 = vrcp.f32 %v370_v18 }
 0x24c   : > { %v765_v19 = vpop.eup %764 }
 0x276   : > { %v412_v20 = vpop.f32.mrf.mxu1 }
 0x277   : > { %v419_v21 = vmul.f32 %v765_v19, %v412_v20 }
 0x278   : > { %v689_v22 = vpop.f32.mrf.mxu1 }
 0x279   : > { %v420_v23 = vadd.f32 %v419_v21, %v310_v1 }
 0x27a   : > { %v415_v24 = vpop.f32.mrf.mxu1 }
 0x27b   : > { %v423_v25 = vsel %vm314_vm1, %v420_v23, 0.0  ;;  %v427_v26 = vmul.f32 %v420_v23, %v420_v23 }
 0x27c   : > { %v690_v27 = vpop.f32.mrf.mxu1  ;;  %424 = vadd.xlane.f32.xlu1 %v423_v25 }
 0x27d   : > { %v428_v28 = vsel %vm314_vm1, %v427_v26, 0.0 }
 0x280   : > { %429 = vadd.xlane.f32.xlu1 %v428_v28 }
 0x305   : > { %v425_v31 = vpop.xlane.xlu1 %424 }
 0x306   : > { %v426_v32 = vmul.f32 0.03125, %v425_v31 }
 0x308   : > { %v432_v34 = vmul.f32 %v426_v32, %v426_v32  ;;  %v435_v39 = vsub.f32 %v420_v23, %v426_v32 }
 0x309   : > { %v430_v33 = vpop.xlane.xlu1 %429 }
 0x30a   : > { %v431_v35 = vmul.f32 0.03125, %v430_v33 }
 0x30c   : > { %v433_v36 = vsub.f32 %v431_v35, %v432_v34 }
 0x30e   : > { %v434_v37 = vmax.f32 %v433_v36, 0.0 }
 0x310   : > { %v436_v38 = vadd.f32 1e-05, %v434_v37 }
 0x312   : > { %766 = vrsqrt.f32 %v436_v38 }
 0x31f   : > { %v767_v40 = vpop.eup %766 }
 0x320   : > { %v438_v42 = vmul.f32 %v767_v40, %v435_v39 }
 0x322   : > { %v445_v44 = vmul.f32 %v660_v41, %v438_v42 }
 0x324   : > { %v452_v45 = vadd.f32 %v661_v43, %v445_v44 }
 0x326   : > { %v453_v46 = vpack.c.bf16 %v452_v45, %v452_v45 }
 0x328   : > { %696 = vmatmul.mubr.msk.bf16.vlgmr.msra.gmra.mxu1 %vm314_vm1, %v453_v46 }
 0x3e8   : > { %v514_v48 = vpop.f32.mrf.mxu1 }
 0x3e9   : > { %v515_v49 = vadd.f32 %v662_v47, %v514_v48 }
 0x3ea   : > { %v697_v50 = vpop.f32.mrf.mxu1 }
 0x3eb   : > { %v520_v51 = vadd.f32 %v515_v49, %v452_v45 }
 0x3ec   : > { %v517_v52 = vpop.f32.mrf.mxu1 }
 0x3ed   : > { %v523_v53 = vsel %vm314_vm1, %v520_v51, 0.0  ;;  %v527_v54 = vmul.f32 %v520_v51, %v520_v51 }
 0x3ee   : > { %524 = vadd.xlane.f32.xlu0 %v523_v53  ;;  %v698_v55 = vpop.f32.mrf.mxu1 }
 0x3ef   : > { %v528_v56 = vsel %vm314_vm1, %v527_v54, 0.0 }
 0x3f0   : > { %529 = vadd.xlane.f32.xlu1 %v528_v56 }
 0x477   : > { %v525_v57 = vpop.xlane.xlu0 %524 }
 0x478   : > { %v526_v58 = vmul.f32 0.03125, %v525_v57 }
 0x479   : > { %v530_v59 = vpop.xlane.xlu1 %529 }
 0x47a   : > { %v532_v60 = vmul.f32 %v526_v58, %v526_v58  ;;  %v531_v61 = vmul.f32 0.03125, %v530_v59  ;;  %v535_v1 = vsub.f32 %v520_v51, %v526_v58 }
 0x47c   : > { %v533_v62 = vsub.f32 %v531_v61, %v532_v60 }
 0x47e   : > { %v534_v63 = vmax.f32 %v533_v62, 0.0 }
 0x480   : > { %v536_v0 = vadd.f32 1e-05, %v534_v63 }
 0x482   : > { %768 = vrsqrt.f32 %v536_v0 }
 0x48f   : > { %v769_v2 = vpop.eup %768 }
 0x490   : > { %v538_v4 = vmul.f32 %v769_v2, %v535_v1 }
 0x492   : > { %v545_v6 = vmul.f32 %v666_v3, %v538_v4 }
 0x494   : > { %v552_v7 = vadd.f32 %v667_v5, %v545_v6 }
 0x496   : > { %553 = vst.msk [vmem:[%s308_s23] sm:$0xff] %vm314_vm1, %v552_v7 }
 0x497   : > { %837 = shalt.err (!%p834_p0)
}
 0x498   : > { %s838_s17 = scalar_lea.hbm %s566_s9, 128  ;;  %s842_s12 = scalar_lea.hbm %s1135_s7, 256 }
 0x499   : > { %p839_p5 = scmp.ne.s32.totalorder %s566_s9, %s838_s17  ;;  %p843_p1 = scmp.lt.s32.totalorder %s566_s9, %s1135_s7 }
 0x49a   : > { %p844_p4 = scmp.lt.s32.totalorder %s842_s12, %s838_s17 }
 0x49b   : > { %p840_p9 = pnand %p839_p5, %p1154_p3 }
 0x49c   : > { %p845_p6 = por %p844_p4, %p843_p1 }
 0x49d   : > { %p841_p12 = pneg %p840_p9 }
 0x49f   : > { %p846_p8 = pnand %p845_p6, %p841_p12 }
 0x4a1   : > { %849 = shalt.err (!%p846_p8)
}
 0x4a2   : > { %705 = dma.vmem_to_hbm [thread:$0]  (%p1154_p3), %s569_s1, 128, %s566_s9, %s555_s19  }
 0x4a3 PF: > { %s580_s11 = sand.u32 1, %s880_s24   ;;  %p1155_p11 = scmp.ne.s32.totalorder %s1142_s8, 0 }
 0x4a4   : > { %p1156_p7 = scmp.ge.s32.totalorder %s892_s27, 2  ;;  %s581_s23 = scalar_lea.sflag [#allocation4], %s580_s11 }
 0x4a6   : > { %p716_p10 = pnand %p1156_p7, %p1155_p11 }
 0x4a8   : > { %p717_p2 = pneg %p716_p10 }
 0x4aa   : > { %875 = dma.done.wait (%p717_p2), %s581_s23, 128  }
 0x4ab   : > { %877 = vsyncadd (%p717_p2), %s581_s23, 4294967168  ;;  %s1157_s21 = sld [smem:[#allocation11_spill]]  ;;  %p21_p13 = scmp.ge.s32.totalorder %s995_s13, 4  }
 0x4ac   : > { %s1158_s24 = smov %s884_s25  ;;  %s1159_s25 = smov %s888_s26 }
 0x4ad   : > { %s1161_s27 = smov %s995_s13  ;;  %23 = sbr.rel (!%p21_p13) target bundleno = 8 (0x8), region = 97 }
 0x4b1   : > { %s1160_s26 = smov %s1157_s21 }
 0x4b2   :  { %586 = vsyncpa [#allocation3], 1 }
 0x4b3   :  { %588 = vsyncpa [#allocation3 + $0x1], 1 }
 0x4b4   :  { %589 = vsyncpa [#allocation6], 1 }
 0x4b5   :  { %590 = vsyncpa [#allocation4], 1 }
 0x4b6   :  { %592 = vsyncpa [#allocation4 + $0x1], 1 }

</bundles_post_ra>
